<compile_context>
chip_gen: v7x
topology: tpu7x:2x2x1
jax: 0.10.0
libtpu: 0.0.40
codegen_flags: <defaults>
</compile_context>

<pallas_src>
import functools

import jax
import jax.numpy as jnp
from jax.experimental import pallas as pl
from jax.experimental.pallas import tpu as pltpu


# ---------------------------------------------------------------------------
# Kernels: one grid step processes TB batch elements.
# Weights arrive pre-transposed (w1t: (F,H), w3t: (H,F)).
# Matmul operand dtype = w1t_ref.dtype (f32 or bf16); accumulation is f32.
# ---------------------------------------------------------------------------

def _attn_nomaster_kernel(x_ref, w1t_ref, b1_ref, w2_ref, w3t_ref, b3_ref,
                          o_ref, *, approx_recip=True):
    TB, N, F = x_ref.shape
    cdt = w1t_ref.dtype
    xr = x_ref[...]
    x_c = xr.astype(cdt)                                   # single cast of the x block
    xf = x_c.reshape(TB * N, F)                            # fold leading dims (lane dim unchanged)
    h = jnp.tanh(
        jnp.dot(xf, w1t_ref[...],
                preferred_element_type=jnp.float32) + b1_ref[...])        # (TB*N, H) f32
    s = jnp.tanh(jnp.sum(h * w2_ref[...], axis=-1, keepdims=True))        # (TB*N, 1)
    s = s.reshape(TB, N, 1)
    # softmax over the node axis (PyTorch dim=1), per batch element
    m = jnp.max(s, axis=1, keepdims=True)
    e = jnp.exp(s - m)
    denom = jnp.sum(e, axis=1, keepdims=True)
    if approx_recip:
        a = e * pl.reciprocal(denom, approx=True)          # (TB, N, 1)
    else:
        a = e / denom
    t = (a.astype(cdt) * x_c).reshape(TB * N, F)           # (TB*N, F)  (F == H)
    o = jnp.dot(t, w3t_ref[...],
                preferred_element_type=jnp.float32) + b3_ref[...]
    o_ref[...] = jnp.maximum(o, 0.0).reshape(TB, N, F)     # full-block store


def _attn_master_kernel(x_ref, w1t_ref, b1_ref, w2_ref, w3t_ref, b3_ref,
                        o_ref, *, approx_recip=True):
    TB, N, F = x_ref.shape
    cdt = w1t_ref.dtype
    xr = x_ref[...]
    x = xr.astype(jnp.float32)                             # f32 for weighting / passthrough
    x_c = xr.astype(cdt)
    xf = x_c.reshape(TB * N, F)
    h = jnp.tanh(
        jnp.dot(xf, w1t_ref[...],
                preferred_element_type=jnp.float32) + b1_ref[...])        # (TB*N, H)
    s = jnp.tanh(jnp.sum(h * w2_ref[...], axis=-1, keepdims=True))        # (TB*N, 1)
    s = s.reshape(TB, N, 1)
    # softmax over the first N-1 nodes (master node excluded), via mask
    node = jax.lax.broadcasted_iota(jnp.int32, (1, N, 1), 1)
    valid = node < (N - 1)
    m = jnp.max(jnp.where(valid, s, -jnp.inf), axis=1, keepdims=True)
    e = jnp.where(valid, jnp.exp(s - m), 0.0)
    denom = jnp.sum(e, axis=1, keepdims=True)
    if approx_recip:
        a = e * pl.reciprocal(denom, approx=True)          # master row = 0
    else:
        a = e / denom
    t = jnp.sum(a * x, axis=1)                             # (TB, F) attended sum, f32
    t = jnp.dot(t.astype(cdt), w3t_ref[...],
                preferred_element_type=jnp.float32) + b3_ref[...]
    # Single full-lane (TB, 2F) store: [relu(fc3(attended)) | master-node feats]
    o_ref[...] = jnp.concatenate([jnp.maximum(t, 0.0), x[:, N - 1, :]], axis=-1)


# ---------------------------------------------------------------------------
# Generation-aware tiling
# ---------------------------------------------------------------------------

def _round_up(x, m):
    return ((x + m - 1) // m) * m


def _chip_info():
    """Returns (num_tensorcores, block_budget_bytes, vmem_limit_cap_bytes)."""
    kind = ""
    try:
        kind = jax.devices()[0].device_kind.lower()
    except Exception:
        pass
    is_v7 = ("v7" in kind) or ("7x" in kind)
    vmem_cap = None
    try:
        vmem_cap = int(pltpu.get_tpu_info().vmem_capacity_bytes)
    except Exception:
        vmem_cap = None
    if not vmem_cap or vmem_cap <= 0:
        vmem_cap = (64 << 20) if is_v7 else (128 << 20)
    num_tc = 2 if is_v7 else 1
    # Budget for double-buffered x/out blocks; leave headroom for weights,
    # intermediates and compiler scratch.
    block_budget = min(vmem_cap // 2, (24 << 20) if is_v7 else (48 << 20))
    vmem_limit_cap = min((vmem_cap * 3) // 4, (48 << 20) if is_v7 else (64 << 20))
    return num_tc, block_budget, vmem_limit_cap


def _pick_tiling(B, in_bytes_per_b, out_bytes_per_b, num_tc, block_budget,
                 sublane_align):
    """TB / grid-steps / padded batch.  No divisor-of-B requirement."""
    per_b = 2 * (in_bytes_per_b + out_bytes_per_b)          # double-buffered
    tb_max = max(1, block_budget // per_b)
    steps = -(-B // tb_max)
    if num_tc > 1 and B >= num_tc * 8:
        steps = _round_up(steps, num_tc)                    # even split across TCs (v7x)
    steps = max(1, steps)
    tb = -(-B // steps)
    if steps > 1 and sublane_align > 1:
        tb = _round_up(tb, sublane_align)                   # (8,128) rule for non-full blocks
    return tb, steps, steps * tb


# ---------------------------------------------------------------------------
# Wrapper
# ---------------------------------------------------------------------------

def attention_forward(x, params, master_node, *,
                      matmul_dtype=jnp.bfloat16,
                      x_dtype=jnp.float32,
                      x_buffers=2):
    x = jnp.asarray(x)
    B, N, F = x.shape
    w1, b1, w2, w3, b3 = params
    H = w1.shape[0]
    assert F == H, "PyTorch forward's view(B, N, 1, nhid) requires in_features == nhid"
    if master_node:
        assert N >= 2, "master_node=True needs at least 2 nodes"

    x = x.astype(x_dtype)
    x_bytes = jnp.dtype(x_dtype).itemsize
    mm_bytes = jnp.dtype(matmul_dtype).itemsize
    use_approx = jnp.dtype(matmul_dtype) != jnp.dtype(jnp.float32)

    # Hoisted once to the wrapper: transposes, reshapes, dtype casts.
    w1t = jnp.asarray(w1).T.astype(matmul_dtype)            # (F, H)
    w3t = jnp.asarray(w3).T.astype(matmul_dtype)            # (H, F)
    b1r = jnp.asarray(b1).reshape(1, H).astype(jnp.float32)
    w2r = jnp.asarray(w2).reshape(1, H).astype(jnp.float32)
    b3r = jnp.asarray(b3).reshape(1, F).astype(jnp.float32)

    out_per_b = (2 * F) if master_node else (N * F)
    num_tc, block_budget, vmem_limit_cap = _chip_info()
    TB, steps, B_pad = _pick_tiling(
        B, N * F * x_bytes, out_per_b * 4, num_tc, block_budget,
        sublane_align=8 if master_node else 1)

    if B_pad != B:
        x = jnp.pad(x, ((0, B_pad - B), (0, 0), (0, 0)))     # zero rows: numerically safe

    if x_buffers != 2:
        x_spec = pl.BlockSpec((TB, N, F), lambda b: (b, 0, 0),
                              pipeline_mode=pl.Buffered(x_buffers))
    else:
        x_spec = pl.BlockSpec((TB, N, F), lambda b: (b, 0, 0))

    in_specs = [
        x_spec,                                              # x (TB batches / step)
        pl.BlockSpec((F, H), lambda b: (0, 0)),              # fc1.weight^T
        pl.BlockSpec((1, H), lambda b: (0, 0)),              # fc1.bias
        pl.BlockSpec((1, H), lambda b: (0, 0)),              # fc2.weight
        pl.BlockSpec((H, F), lambda b: (0, 0)),              # fc3.weight^T
        pl.BlockSpec((1, F), lambda b: (0, 0)),              # fc3.bias
    ]

    if master_node:
        kernel = functools.partial(_attn_master_kernel, approx_recip=use_approx)
        out_shape = jax.ShapeDtypeStruct((B_pad, 2 * F), jnp.float32)
        out_spec = pl.BlockSpec((TB, 2 * F), lambda b: (b, 0))
        flops = 2 * B * N * F * H + 2 * B * N * H + 2 * B * H * F
    else:
        kernel = functools.partial(_attn_nomaster_kernel, approx_recip=use_approx)
        out_shape = jax.ShapeDtypeStruct((B_pad, N, F), jnp.float32)
        out_spec = pl.BlockSpec((TB, N, F), lambda b: (b, 0, 0))
        flops = 2 * B * N * F * H + 2 * B * N * H + 2 * B * N * H * F

    in_blk = TB * N * F * x_bytes
    out_blk = TB * out_per_b * 4
    wbytes = (F * H + H * F) * mm_bytes + (H + H + F) * 4
    vmem_limit = 2 * (in_blk + out_blk) + 2 * wbytes + (2 << 20)
    vmem_limit = int(max(8 << 20, min(vmem_limit, vmem_limit_cap)))

    cost = pl.CostEstimate(
        flops=int(flops),
        transcendentals=int(B * N * (H + 2)),               # tanh(fc1), tanh(fc2), exp
        bytes_accessed=int(B * N * F * x_bytes + B * out_per_b * 4 + wbytes),
    )

    out = pl.pallas_call(
        kernel,
        out_shape=out_shape,
        grid=(steps,),
        in_specs=in_specs,
        out_specs=out_spec,
        compiler_params=pltpu.CompilerParams(
            dimension_semantics=("parallel",),
            vmem_limit_bytes=vmem_limit,
        ),
        cost_estimate=cost,
    )(x, w1t, b1r, w2r, w3t, b3r)

    if B_pad != B:
        out = out[:B]
    return out                                              # (B, 2F) or (B, N, F)


# ---------------------------------------------------------------------------
# Pure-JAX reference (for correctness check)
# ---------------------------------------------------------------------------

def attention_ref(x, params, master_node):
    w1, b1, w2, w3, b3 = params
    h = jnp.tanh(x @ w1.T + b1)
    s = jnp.tanh(h @ w2.T)                                   # (B, N, 1)
    if master_node:
        a = jax.nn.softmax(s[:, :-1, :], axis=1)
        t = jnp.sum(a * x[:, :-1, :], axis=1)                # (B, F)
        t = jax.nn.relu(t @ w3.T + b3)
        return jnp.concatenate([t, x[:, -1, :]], axis=1)
    else:
        a = jax.nn.softmax(s, axis=1)
        t = a * x
        return jax.nn.relu(t @ w3.T + b3)


# ---------------------------------------------------------------------------
# Deterministic parameter init (PyTorch nn.Linear default: U(-1/sqrt(fan_in), .))
# ---------------------------------------------------------------------------

def init_params(key, in_features, nhid):
    k1, k2, k3, k4, k5 = jax.random.split(key, 5)
    lim1 = 1.0 / jnp.sqrt(jnp.float32(in_features))
    lim3 = 1.0 / jnp.sqrt(jnp.float32(nhid))
    w1 = jax.random.uniform(k1, (nhid, in_features), jnp.float32, -lim1, lim1)
    b1 = jax.random.uniform(k2, (nhid,), jnp.float32, -lim1, lim1)
    w2 = jax.random.uniform(k3, (1, nhid), jnp.float32, -lim3, lim3)
    w3 = jax.random.uniform(k4, (in_features, nhid), jnp.float32, -lim3, lim3)
    b3 = jax.random.uniform(k5, (in_features,), jnp.float32, -lim3, lim3)
    return (w1, b1, w2, w3, b3)


if __name__ == "__main__":
    in_features = nhid = 32            # required equal by the PyTorch view()
    key = jax.random.PRNGKey(0)
    kx, kp = jax.random.split(key)
    params = init_params(kp, in_features, nhid)

    # (16, 8): nominal case; (11, 8): non-divisible batch exercises padding path.
    for B, N in ((16, 8), (11, 8)):
        x = jax.random.normal(jax.random.fold_in(kx, B), (B, N, in_features),
                              jnp.float32)
        for master in (True, False):
            ref = attention_ref(x, params, master)

            # f32-operand path (exact divide) — tight tolerance
            out = attention_forward(x, params, master, matmul_dtype=jnp.float32)
            jax.block_until_ready(out)
            assert out.shape == ref.shape
            assert jnp.allclose(out, ref, atol=1e-4, rtol=1e-4), (
                f"f32 mismatch (B={B}, master={master}): "
                f"{jnp.max(jnp.abs(out - ref))}")

            # default path: bf16 MXU operands + approx reciprocal — loose tolerance
            out_bf = attention_forward(x, params, master)
            jax.block_until_ready(out_bf)
            assert out_bf.shape == ref.shape
            assert jnp.allclose(out_bf, ref, atol=5e-2, rtol=5e-2), (
                f"bf16 mismatch (B={B}, master={master}): "
                f"{jnp.max(jnp.abs(out_bf - ref))}")

    print("KERNEL_OK")
</pallas_src>

<mosaic_0001>
module attributes {stable_mosaic.version = 11 : i64} {
  func.func @_attn_master_kernel(%arg0: i32, %arg1: memref<16x8x32xf32, #tpu.memory_space<vmem>>, %arg2: memref<32x32xf32, #tpu.memory_space<vmem>>, %arg3: memref<1x32xf32, #tpu.memory_space<vmem>>, %arg4: memref<1x32xf32, #tpu.memory_space<vmem>>, %arg5: memref<32x32xf32, #tpu.memory_space<vmem>>, %arg6: memref<1x32xf32, #tpu.memory_space<vmem>>, %arg7: memref<16x64xf32, #tpu.memory_space<vmem>>) attributes {dimension_semantics = [#tpu.dimension_semantics<parallel>], iteration_bounds = array<i64: 1>, scalar_prefetch = 0 : i64, scratch_operands = 0 : i64, tpu.core_type = #tpu.core_type<tc>, window_params = [{transform_indices = @transform_0, window_bounds = array<i64: 16, 8, 32>}, {pipeline_mode = #tpu.pipeline_mode<synchronous>, transform_indices = @transform_1, window_bounds = array<i64: 32, 32>}, {pipeline_mode = #tpu.pipeline_mode<synchronous>, transform_indices = @transform_2, window_bounds = array<i64: 1, 32>}, {pipeline_mode = #tpu.pipeline_mode<synchronous>, transform_indices = @transform_3, window_bounds = array<i64: 1, 32>}, {pipeline_mode = #tpu.pipeline_mode<synchronous>, transform_indices = @transform_4, window_bounds = array<i64: 32, 32>}, {pipeline_mode = #tpu.pipeline_mode<synchronous>, transform_indices = @transform_5, window_bounds = array<i64: 1, 32>}, {transform_indices = @transform_6, window_bounds = array<i64: 16, 64>}]} {
    %c0 = arith.constant 0 : index
    %c0_0 = arith.constant 0 : index
    %c0_1 = arith.constant 0 : index
    %0 = vector.load %arg1[%c0, %c0_0, %c0_1] : memref<16x8x32xf32, #tpu.memory_space<vmem>>, vector<16x8x32xf32>
    %1 = vector.shape_cast %0 : vector<16x8x32xf32> to vector<128x32xf32>
    %c0_2 = arith.constant 0 : index
    %c0_3 = arith.constant 0 : index
    %2 = vector.load %arg2[%c0_2, %c0_3] : memref<32x32xf32, #tpu.memory_space<vmem>>, vector<32x32xf32>
    %cst = arith.constant dense<0.000000e+00> : vector<128x32xf32>
    %3 = tpu.matmul %1, %2, %cst {dimension_numbers = #tpu.dot_dimension_numbers<[1], [0], [0], [1], [0, 0, 1, 1], [], []>} : vector<128x32xf32>, vector<32x32xf32>, vector<128x32xf32> -> vector<128x32xf32>
    %c0_4 = arith.constant 0 : index
    %c0_5 = arith.constant 0 : index
    %4 = vector.load %arg3[%c0_4, %c0_5] : memref<1x32xf32, #tpu.memory_space<vmem>>, vector<1x32xf32>
    %5 = vector.broadcast %4 : vector<1x32xf32> to vector<128x32xf32>
    %6 = arith.addf %3, %5 : vector<128x32xf32>
    %7 = math.tanh %6 : vector<128x32xf32>
    %c0_6 = arith.constant 0 : index
    %c0_7 = arith.constant 0 : index
    %8 = vector.load %arg4[%c0_6, %c0_7] : memref<1x32xf32, #tpu.memory_space<vmem>>, vector<1x32xf32>
    %9 = vector.broadcast %8 : vector<1x32xf32> to vector<128x32xf32>
    %10 = arith.mulf %7, %9 : vector<128x32xf32>
    %cst_8 = arith.constant dense<0.000000e+00> : vector<128xf32>
    %11 = vector.multi_reduction <add>, %10, %cst_8 [1] : vector<128x32xf32> to vector<128xf32>
    %12 = vector.shape_cast %11 : vector<128xf32> to vector<128x1xf32>
    %13 = math.tanh %12 : vector<128x1xf32>
    %14 = vector.shape_cast %13 : vector<128x1xf32> to vector<16x8x1xf32>
    %15 = tpu.iota {dimensions = array<i32: 1>} : vector<1x8x1xi32>
    %c7_i32 = arith.constant 7 : i32
    %16 = vector.broadcast %c7_i32 : i32 to vector<1x8x1xi32>
    %17 = arith.cmpi slt, %15, %16 : vector<1x8x1xi32>
    %cst_9 = arith.constant 0xFF800000 : f32
    %18 = vector.shape_cast %17 : vector<1x8x1xi1> to vector<1x8x1xi1>
    %19 = vector.broadcast %18 : vector<1x8x1xi1> to vector<16x8x1xi1>
    %20 = vector.broadcast %cst_9 : f32 to vector<16x8x1xf32>
    %21 = arith.select %19, %14, %20 : vector<16x8x1xi1>, vector<16x8x1xf32>
    %cst_10 = arith.constant dense<0xFF800000> : vector<16x1xf32>
    %22 = vector.multi_reduction <maximumf>, %21, %cst_10 [1] : vector<16x8x1xf32> to vector<16x1xf32>
    %23 = vector.shape_cast %22 : vector<16x1xf32> to vector<16x1x1xf32>
    %24 = vector.broadcast %23 : vector<16x1x1xf32> to vector<16x8x1xf32>
    %25 = arith.subf %14, %24 : vector<16x8x1xf32>
    %26 = math.exp %25 : vector<16x8x1xf32>
    %cst_11 = arith.constant 0.000000e+00 : f32
    %27 = vector.shape_cast %17 : vector<1x8x1xi1> to vector<1x8x1xi1>
    %28 = vector.broadcast %27 : vector<1x8x1xi1> to vector<16x8x1xi1>
    %29 = vector.broadcast %cst_11 : f32 to vector<16x8x1xf32>
    %30 = arith.select %28, %26, %29 : vector<16x8x1xi1>, vector<16x8x1xf32>
    %cst_12 = arith.constant dense<0.000000e+00> : vector<16x1xf32>
    %31 = vector.multi_reduction <add>, %30, %cst_12 [1] : vector<16x8x1xf32> to vector<16x1xf32>
    %32 = vector.shape_cast %31 : vector<16x1xf32> to vector<16x1x1xf32>
    %33 = vector.broadcast %32 : vector<16x1x1xf32> to vector<16x8x1xf32>
    %34 = arith.divf %30, %33 : vector<16x8x1xf32>
    %35 = vector.broadcast %34 : vector<16x8x1xf32> to vector<16x8x32xf32>
    %36 = arith.mulf %35, %0 : vector<16x8x32xf32>
    %cst_13 = arith.constant dense<0.000000e+00> : vector<16x32xf32>
    %37 = vector.multi_reduction <add>, %36, %cst_13 [1] : vector<16x8x32xf32> to vector<16x32xf32>
    %c0_14 = arith.constant 0 : index
    %c0_15 = arith.constant 0 : index
    %38 = vector.load %arg5[%c0_14, %c0_15] : memref<32x32xf32, #tpu.memory_space<vmem>>, vector<32x32xf32>
    %cst_16 = arith.constant dense<0.000000e+00> : vector<16x32xf32>
    %39 = tpu.matmul %37, %38, %cst_16 {dimension_numbers = #tpu.dot_dimension_numbers<[1], [0], [0], [1], [0, 0, 1, 1], [], []>} : vector<16x32xf32>, vector<32x32xf32>, vector<16x32xf32> -> vector<16x32xf32>
    %c0_17 = arith.constant 0 : index
    %c0_18 = arith.constant 0 : index
    %40 = vector.load %arg6[%c0_17, %c0_18] : memref<1x32xf32, #tpu.memory_space<vmem>>, vector<1x32xf32>
    %41 = vector.broadcast %40 : vector<1x32xf32> to vector<16x32xf32>
    %42 = arith.addf %39, %41 : vector<16x32xf32>
    %cst_19 = arith.constant 0.000000e+00 : f32
    %43 = vector.broadcast %cst_19 : f32 to vector<16x32xf32>
    %44 = arith.maximumf %42, %43 : vector<16x32xf32>
    %45 = vector.extract_strided_slice %0 {offsets = [0, 7, 0], sizes = [16, 1, 32], strides = [1, 1, 1]} : vector<16x8x32xf32> to vector<16x1x32xf32>
    %46 = vector.shape_cast %45 : vector<16x1x32xf32> to vector<16x32xf32>
    %47 = tpu.concatenate %44, %46 in 1 : vector<16x32xf32>, vector<16x32xf32> -> vector<16x64xf32>
    %c0_20 = arith.constant 0 : index
    %c0_21 = arith.constant 0 : index
    %48 = vector.load %arg7[%c0_20, %c0_21] : memref<16x64xf32, #tpu.memory_space<vmem>>, vector<16x64xf32>
    tpu.vector_store %arg7[%c0_20, %c0_21], %47 {strides = array<i32>} : memref<16x64xf32, #tpu.memory_space<vmem>>, vector<16x64xf32>,
    return
  }
  func.func @transform_0(%arg0: i32) -> (i32, i32, i32) {
    %c0_i32 = arith.constant 0 : i32
    %c0_i32_0 = arith.constant 0 : i32
    %c0_i32_1 = arith.constant 0 : i32
    return %arg0, %c0_i32, %c0_i32_0 : i32, i32, i32
  }
  func.func @transform_1(%arg0: i32) -> (i32, i32) {
    %c0_i32 = arith.constant 0 : i32
    %c0_i32_0 = arith.constant 0 : i32
    %c0_i32_1 = arith.constant 0 : i32
    return %c0_i32, %c0_i32_0 : i32, i32
  }
  func.func @transform_2(%arg0: i32) -> (i32, i32) {
    %c0_i32 = arith.constant 0 : i32
    %c0_i32_0 = arith.constant 0 : i32
    %c0_i32_1 = arith.constant 0 : i32
    return %c0_i32, %c0_i32_0 : i32, i32
  }
  func.func @transform_3(%arg0: i32) -> (i32, i32) {
    %c0_i32 = arith.constant 0 : i32
    %c0_i32_0 = arith.constant 0 : i32
    %c0_i32_1 = arith.constant 0 : i32
    return %c0_i32, %c0_i32_0 : i32, i32
  }
  func.func @transform_4(%arg0: i32) -> (i32, i32) {
    %c0_i32 = arith.constant 0 : i32
    %c0_i32_0 = arith.constant 0 : i32
    %c0_i32_1 = arith.constant 0 : i32
    return %c0_i32, %c0_i32_0 : i32, i32
  }
  func.func @transform_5(%arg0: i32) -> (i32, i32) {
    %c0_i32 = arith.constant 0 : i32
    %c0_i32_0 = arith.constant 0 : i32
    %c0_i32_1 = arith.constant 0 : i32
    return %c0_i32, %c0_i32_0 : i32, i32
  }
  func.func @transform_6(%arg0: i32) -> (i32, i32) {
    %c0_i32 = arith.constant 0 : i32
    %c0_i32_0 = arith.constant 0 : i32
    return %arg0, %c0_i32 : i32, i32
  }
}

</mosaic_0001>

<bundles_post_ra>
// kernel: tpu_custom_call.1
= control target key start
LH: loop header
LB: loop body
LE: loop exit
PB: predicated region body
PF: predicated region fallthrough
CT: control target
= control target key end

     0   :  { %11 = vsyncpa [#allocation3], 0  ;;  %s1907_s0 = inlined_call_operand.hbm [shape: f32[16,8,32], index: 0, kind: input, shape index: {}]   ;;  %s1908_s1 = inlined_call_operand.hbm [shape: f32[32,32], index: 1, kind: input, shape index: {}]   ;;  %s1909_s2 = inlined_call_operand.vmem [shape: f32[1,32], index: 2, kind: input, shape index: {}]   ;;  %s1910_s3 = inlined_call_operand.vmem [shape: f32[1,32], index: 3, kind: input, shape index: {}]   ;;  %s1911_s4 = inlined_call_operand.hbm [shape: f32[32,32], index: 4, kind: input, shape index: {}]   ;;  %s1912_s5 = inlined_call_operand.vmem [shape: f32[1,32], index: 5, kind: input, shape index: {}]   ;;  %s1913_s6 = inlined_call_operand.hbm [shape: f32[16,64], index: 6, kind: output, shape index: {}]  }
   0x1   :  { %12 = vsyncpa [#allocation6], 0 }
   0x2   :  { %13 = vsyncpa [#allocation4], 0  ;;  %s1364_s21 = smov [#allocation5]   ;;  %s1365_s23 = smov [#allocation2]  }
   0x3   :  { %s31_s22 = sshll.u32 %s1364_s21, 4  ;;  %s19_s24 = sshll.u32 %s1365_s23, 4  ;;  %s32_s22 = int_to_ptr.vmem [resolvable:$true] %s31_s22  ;;  %s1406_s24 = int_to_ptr.vmem [resolvable:$true] %s19_s24 }
   0x4   :  { %s1270_s27 = scalar_lea.hbm %s1908_s1, 512 }
   0x5   :  { %p1271_p0 = scmp.ne.s32.totalorder %s1908_s1, %s1270_s27  ;;  %p1274_p1 = scmp.lt.u32.totalorder %s1270_s27, %s1908_s1 }
   0x7   :  { %p1276_p2 = pnand %p1274_p1, %p1271_p0 }
   0x9   :  { %1279 = shalt.err (!%p1276_p2)
}
   0xa   :  { %s1280_s8 = scalar_lea.vmem %s32_s22, 512  ;;  %p1285_p4 = scmp.lt.s32.totalorder %s32_s22, %s32_s22 }
   0xb   :  { %p1281_p3 = scmp.ne.s32.totalorder %s32_s22, %s1280_s8  ;;  %p1286_p5 = scmp.lt.s32.totalorder %s1280_s8, %s1280_s8 }
   0xd   :  { %p1287_p6 = por %p1286_p5, %p1285_p4 }
   0xf   :  { %p1288_p7 = pnand %p1287_p6, %p1281_p3 }
  0x11   :  { %1291 = shalt.err (!%p1288_p7)
}
  0x12   :  { %s1366_s9 = smov 128   ;;  %s1367_s10 = smov 8  }
  0x13   :  { %37 = dma.hbm_to_vmem [thread:$0]  %s1908_s1, 512, %s32_s22, [#allocation6], %s1366_s9, %s1366_s9, %s1367_s10  }
  0x14   :  { %s1292_s15 = scalar_lea.hbm %s1907_s0, 2048 }
  0x15   :  { %p1293_p8 = scmp.ne.s32.totalorder %s1907_s0, %s1292_s15  ;;  %p1296_p9 = scmp.lt.u32.totalorder %s1292_s15, %s1907_s0 }
  0x17   :  { %p1298_p10 = pnand %p1296_p9, %p1293_p8 }
  0x19   :  { %1301 = shalt.err (!%p1298_p10)
}
  0x1a   :  { %s1302_s20 = scalar_lea.vmem %s1406_s24, 2048  ;;  %p1307_p12 = scmp.lt.s32.totalorder %s1406_s24, %s1406_s24 }
  0x1b   :  { %p1303_p11 = scmp.ne.s32.totalorder %s1406_s24, %s1302_s20  ;;  %p1308_p13 = scmp.lt.s32.totalorder %s1302_s20, %s1302_s20 }
  0x1d   :  { %p1309_p0 = por %p1308_p13, %p1307_p12 }
  0x1f   :  { %p1310_p1 = pnand %p1309_p0, %p1303_p11 }
  0x21   :  { %1313 = shalt.err (!%p1310_p1)
}
  0x22   :  { %25 = dma.hbm_to_vmem [thread:$0]  %s1907_s0, 2048, %s1406_s24, [#allocation3], %s1366_s9, %s1366_s9, %s1367_s10  }
  0x23   :  { %s1368_s22 = smov [#allocation7]   ;;  %s1314_s27 = scalar_lea.hbm %s1911_s4, 512 }
  0x24   :  { %s47_s23 = sshll.u32 %s1368_s22, 4  ;;  %p1315_p2 = scmp.ne.s32.totalorder %s1911_s4, %s1314_s27  ;;  %s48_s23 = int_to_ptr.vmem [resolvable:$true] %s47_s23 }
  0x25   :  { %p1318_p3 = scmp.lt.u32.totalorder %s1314_s27, %s1911_s4 }
  0x27   :  { %p1320_p4 = pnand %p1318_p3, %p1315_p2 }
  0x29   :  { %1323 = shalt.err (!%p1320_p4)
}
  0x2a   :  { %s1324_s8 = scalar_lea.vmem %s48_s23, 512  ;;  %p1329_p6 = scmp.lt.s32.totalorder %s48_s23, %s48_s23 }
  0x2b   :  { %p1325_p5 = scmp.ne.s32.totalorder %s48_s23, %s1324_s8  ;;  %p1330_p7 = scmp.lt.s32.totalorder %s1324_s8, %s1324_s8 }
  0x2d   :  { %p1331_p8 = por %p1330_p7, %p1329_p6 }
  0x2f   :  { %p1332_p9 = pnand %p1331_p8, %p1325_p5 }
  0x31   :  { %1335 = shalt.err (!%p1332_p9)
}
  0x32   :  { %53 = dma.hbm_to_vmem [thread:$0]  %s1911_s4, 512, %s48_s23, [#allocation6], %s1366_s9, %s1366_s9, %s1367_s10  }
  0x33   :  { %1358 = dma.done.wait [#allocation3], 2048  }
  0x34   :  { %1359 = vsyncadd [#allocation3], 4294965248 }
  0x35   :  { %1360 = dma.done.wait [#allocation6], 1024  }
  0x36   :  { %1361 = vsyncadd [#allocation6], 4294966272  ;;  %vm92_vm0 = vcmask 261120   ;;  %v81_v0 = vld [vmem:[#allocation5] sm:$0xff]  ;;  %v82_v1 = vld [vmem:[#allocation5 + $0x8] sm:$0xff]  ;;  %vm853_vm2 = vcmask 1041409  }
  0x37   :  { %v83_v2 = vld [vmem:[#allocation5 + $0x10] sm:$0xff]  ;;  %v1102_v3 = vpack.c.bf16 %v82_v1, %v81_v0  ;;  %v84_v4 = vld [vmem:[#allocation5 + $0x18] sm:$0xff]  ;;  %v1458_v5 = vld [vmem:[#allocation2] sm:$0xff]  ;;  %vm855_vm3 = vcmask 1042434   ;;  %vm857_vm4 = vcmask 1043459   ;;  %vm859_vm5 = vcmask 1044484  }
  0x38   :  { %v1106_v6 = vpack.c.bf16 %v84_v4, %v83_v2  ;;  %1067 = vmatprep.mubr.msk.f32.mxu0 %vm92_vm0, %v1458_v5  ;;  %v1462_v7 = vld [vmem:[#allocation2 + $0x50] sm:$0xff]  ;;  %v1466_v8 = vld [vmem:[#allocation2 + $0x8] sm:$0xff]  ;;  %v1468_v9 = vld [vmem:[#allocation2 + $0x58] sm:$0xff]  ;;  %vm861_vm6 = vcmask 1045509   ;;  %vm863_vm7 = vcmask 1046534   ;;  %vm865_vm8 = vcmask 1047559  }
  0x39   :  { %1103 = vmatprep.subr.bf16.mxu0 %v1102_v3  ;;  %1118 = vmatprep.subr.bf16.mxu1 %v1102_v3  ;;  %v1470_v10 = vld [vmem:[#allocation2 + $0x10] sm:$0xff]  ;;  %v77_v11 = vld [vmem:[#allocation2 + $0x60] sm:$0xff]  ;;  %v1478_v12 = vld [vmem:[#allocation2 + $0x18] sm:$0xff]  ;;  %s1370_s15 = smov [#allocation8]   ;;  %vm991_vm9 = vcmask 523264  }
  0x3a   :  { %1105 = vmatpush3.bf16.msra.mxu0 %v1102_v3  ;;  %1120 = vmatpush3.bf16.msra.mxu1 %v1102_v3  ;;  %v1481_v13 = vld [vmem:[#allocation2 + $0x68] sm:$0xff]  ;;  %v1483_v14 = vld [vmem:[#allocation2 + $0x20] sm:$0xff]  ;;  %v79_v15 = vld [vmem:[#allocation2 + $0x70] sm:$0xff]  ;;  %s999_s16 = sshll.u32 %s1370_s15, 4  ;;  %s1000_s16 = int_to_ptr.vmem [resolvable:$true] %s999_s16 }
  0x3b   :  { %1107 = vmatprep.subr.bf16.mxu0 %v1106_v6  ;;  %1119 = vmatprep.subr.bf16.mxu1 %v1106_v6  ;;  %v1491_v16 = vld [vmem:[#allocation2 + $0x28] sm:$0xff]  ;;  %v80_v17 = vld [vmem:[#allocation2 + $0x78] sm:$0xff]  ;;  %v1494_v18 = vld [vmem:[#allocation2 + $0x30] sm:$0xff]  ;;  %s1336_s17 = scalar_lea.vmem %s1000_s16, 256  ;;  %p1341_p11 = scmp.lt.s32.totalorder %s1000_s16, %s1000_s16 }
  0x3c   :  { %1082 = vmatprep.mubr.msk.f32.mxu1 %vm92_vm0, %v1462_v7  ;;  %v72_v19 = vld [vmem:[#allocation2 + $0x38] sm:$0xff]  ;;  %v1501_v20 = vld [vmem:[#allocation2 + $0x40] sm:$0xff]  ;;  %v1506_v21 = vld [vmem:[#allocation2 + $0x48] sm:$0xff]  ;;  %p1337_p10 = scmp.ne.s32.totalorder %s1000_s16, %s1336_s17  ;;  %p1342_p12 = scmp.lt.s32.totalorder %s1336_s17, %s1336_s17 }
  0x3d   :  { %v1513_v22 = vld [vmem:[%s1909_s2] ss:$0 sm:$0xff] }
  0x3e   :  { %1109 = vmatpush3.bf16.msra.mxu0 %v1106_v6  ;;  %1121 = vmatpush3.bf16.msra.mxu1 %v1106_v6  ;;  %v1527_v44 = vld [vmem:[%s1910_s3] ss:$0 sm:$0xff]  ;;  %s1369_s3 = smov 32   ;;  %p1343_p13 = por %p1342_p12, %p1341_p11 }
  0x40   :  { %p1344_p0 = pnand %p1343_p13, %p1337_p10 }
  0x41   :  { %1068 = vmatmul.mubr.msk.f32.vlgmr.msra.gmra.mrb[0].mxu0 %vm92_vm0, %v1466_v8  ;;  %1083 = vmatmul.mubr.msk.f32.vlgmr.msra.gmra.mrb[0].mxu1 %vm92_vm0, %v1468_v9 }
  0x42   :  { %1070 = vmatprep.mubr.msk.f32.mxu0 %vm92_vm0, %v1470_v10  ;;  %1085 = vmatprep.mubr.msk.f32.mxu1 %vm92_vm0, %v77_v11 }
  0x45   :  { %1071 = vmatmul.mubr.msk.f32.gmra.mrb[2].mxu0 %vm92_vm0, %v1478_v12  ;;  %1086 = vmatmul.mubr.msk.f32.gmra.mrb[2].mxu1 %vm92_vm0, %v1481_v13 }
  0x46   :  { %1073 = vmatprep.mubr.msk.f32.mxu0 %vm92_vm0, %v1483_v14  ;;  %1088 = vmatprep.mubr.msk.f32.mxu1 %vm92_vm0, %v79_v15 }
  0x49   :  { %1074 = vmatmul.mubr.msk.f32.gmra.mrb[4].mxu0 %vm92_vm0, %v1491_v16  ;;  %1089 = vmatmul.mubr.msk.f32.gmra.mrb[4].mxu1 %vm92_vm0, %v80_v17 }
  0x4a   :  { %1076 = vmatprep.mubr.msk.f32.mxu0 %vm92_vm0, %v1494_v18 }
  0x4d   :  { %1077 = vmatmul.mubr.msk.f32.gmra.mrb[6].mxu0 %vm92_vm0, %v72_v19 }
  0x4e   :  { %1079 = vmatprep.mubr.msk.f32.mxu0 %vm92_vm0, %v1501_v20 }
  0x51   :  { %1080 = vmatmul.mubr.msk.f32.gmra.mrb[8].mxu0 %vm92_vm0, %v1506_v21 }
 0x114   :  { %v1069_v23 = vpop.f32.mrb[0].mxu0  ;;  %v1084_v24 = vpop.f32.mrb[0].mxu1 }
 0x115   :  { %v213_v25 = vadd.f32 %v1069_v23, %v1513_v22  ;;  %v207_v26 = vpop.f32.mrb[1].mxu0  ;;  %v263_v27 = vadd.f32 %v1084_v24, %v1513_v22  ;;  %v257_v28 = vpop.f32.mrb[1].mxu1 }
 0x116   :  { %v208_v29 = vadd.f32 %v1513_v22, %v207_v26  ;;  %v258_v36 = vadd.f32 %v1513_v22, %v257_v28 }
 0x117   :  { %1129 = vtanh.f32 %v213_v25 }
 0x118   :  { %v1072_v30 = vpop.f32.mrb[2].mxu0  ;;  %v1087_v31 = vpop.f32.mrb[2].mxu1  ;;  %1131 = vtanh.f32 %v263_v27 }
 0x119   :  { %v223_v32 = vadd.f32 %v1072_v30, %v1513_v22  ;;  %v217_v33 = vpop.f32.mrb[3].mxu0  ;;  %v267_v34 = vpop.f32.mrb[3].mxu1  ;;  %1133 = vtanh.f32 %v208_v29  ;;  %v273_v62 = vadd.f32 %v1087_v31, %v1513_v22 }
 0x11a   :  { %v218_v35 = vadd.f32 %v1513_v22, %v217_v33  ;;  %v268_v41 = vadd.f32 %v1513_v22, %v267_v34 }
 0x11b   :  { %1135 = vtanh.f32 %v223_v32 }
 0x11c   :  { %1137 = vtanh.f32 %v218_v35  ;;  %v1075_v37 = vpop.f32.mrb[4].mxu0  ;;  %v1090_v38 = vpop.f32.mrb[4].mxu1 }
 0x11d   :  { %v233_v39 = vadd.f32 %v1075_v37, %v1513_v22  ;;  %v227_v40 = vpop.f32.mrb[5].mxu0  ;;  %v277_v42 = vpop.f32.mrb[5].mxu1  ;;  %1139 = vtanh.f32 %v258_v36  ;;  %v283_v28 = vadd.f32 %v1090_v38, %v1513_v22 }
 0x11e   :  { %v228_v43 = vadd.f32 %v1513_v22, %v227_v40  ;;  %v278_v4 = vadd.f32 %v1513_v22, %v277_v42 }
 0x11f   :  { %1141 = vtanh.f32 %v233_v39 }
 0x120   :  { %v1078_v45 = vpop.f32.mrb[6].mxu0  ;;  %1143 = vtanh.f32 %v268_v41 }
 0x121   :  { %v1130_v46 = vpop.eup %1129  ;;  %v237_v47 = vpop.f32.mrb[7].mxu0  ;;  %1145 = vtanh.f32 %v228_v43  ;;  %v243_v15 = vadd.f32 %v1078_v45, %v1513_v22 }
 0x122   :  { %v310_v48 = vmul.f32 %v1130_v46, %v1527_v44  ;;  %v238_v49 = vadd.f32 %v1513_v22, %v237_v47  ;;  %v1132_v50 = vpop.eup %1131 }
 0x123   :  { %v1134_v51 = vpop.eup %1133  ;;  %v320_v54 = vmul.f32 %v1132_v50, %v1527_v44 }
 0x124   :  { %v328_v52 = vsel %vm92_vm0, %v310_v48, 0.0  ;;  %v1081_v53 = vpop.f32.mrb[8].mxu0  ;;  %1147 = vtanh.f32 %v238_v49  ;;  %v309_v2 = vmul.f32 %v1134_v51, %v1527_v44 }
 0x125   :  { %v1136_v55 = vpop.eup %1135  ;;  %329 = vadd.xlane.f32.xlu0 %v328_v52  ;;  %v253_v56 = vadd.f32 %v1081_v53, %v1513_v22  ;;  %v247_v57 = vpop.f32.mrb[9].mxu0  ;;  %v358_v59 = vsel %vm92_vm0, %v320_v54, 0.0  ;;  %v826_v53 = vld [vmem:[#allocation7] sm:$0xff]  ;;  %v827_v54 = vld [vmem:[#allocation7 + $0x8] sm:$0xff] }
 0x126   :  { %v1138_v58 = vpop.eup %1137  ;;  %v312_v60 = vmul.f32 %v1136_v55, %v1527_v44  ;;  %v248_v61 = vadd.f32 %v1513_v22, %v247_v57  ;;  %v325_v19 = vsel %vm92_vm0, %v309_v2, 0.0  ;;  %v828_v55 = vld [vmem:[#allocation7 + $0x10] sm:$0xff]  ;;  %v829_v57 = vld [vmem:[#allocation7 + $0x18] sm:$0xff] }
 0x127   :  { %1149 = vtanh.f32 %v253_v56  ;;  %v1140_v63 = vpop.eup %1139  ;;  %v311_v1 = vmul.f32 %v1138_v58, %v1527_v44  ;;  %v1110_v56 = vpack.c.bf16 %v827_v54, %v826_v53  ;;  %v1114_v58 = vpack.c.bf16 %v829_v57, %v828_v55 }
 0x128   :  { %v334_v0 = vsel %vm92_vm0, %v312_v60, 0.0  ;;  %1151 = vtanh.f32 %v248_v61  ;;  %v319_v23 = vmul.f32 %v1140_v63, %v1527_v44  ;;  %v389_v60 = vlaneseq }
 0x129   :  { %v1142_v3 = vpop.eup %1141  ;;  %359 = vadd.xlane.f32.xlu0 %v358_v59  ;;  %335 = vadd.xlane.f32.xlu1 %v334_v0  ;;  %1153 = vtanh.f32 %v273_v62  ;;  %v331_v17 = vsel %vm92_vm0, %v311_v1, 0.0 }
 0x12a   :  { %v314_v6 = vmul.f32 %v1142_v3, %v1527_v44  ;;  %v1144_v11 = vpop.eup %1143  ;;  %1155 = vtanh.f32 %v278_v4  ;;  %v355_v29 = vsel %vm92_vm0, %v319_v23, 0.0  ;;  %1111 = vmatprep.subr.bf16.mxu1 %v1110_v56  ;;  %v1568_v62 = vshrl.u32 %v389_v60, 7 }
 0x12b   :  { %v1146_v24 = vpop.eup %1145  ;;  %v321_v26 = vmul.f32 %v1144_v11, %v1527_v44  ;;  %1157 = vtanh.f32 %v243_v15  ;;  %1113 = vmatpush3.bf16.msra.mxu1 %v1110_v56 }
 0x12c   :  { %v340_v25 = vsel %vm92_vm0, %v314_v6, 0.0  ;;  %v313_v30 = vmul.f32 %v1146_v24, %v1527_v44  ;;  %1159 = vtanh.f32 %v283_v28  ;;  %1115 = vmatprep.subr.bf16.mxu1 %v1114_v58  ;;  %vm391_vm1 = vcmp.lt.s32.totalorder %v1568_v62, 7 }
 0x12d   :  { %332 = vadd.xlane.f32.xlu1 %v331_v17  ;;  %326 = vadd.xlane.f32.xlu0 %v325_v19  ;;  %v361_v32 = vsel %vm92_vm0, %v321_v26, 0.0 }
 0x12e   :  { %v1148_v27 = vpop.eup %1147  ;;  %v337_v36 = vsel %vm92_vm0, %v313_v30, 0.0 }
 0x12f   :  { %v315_v33 = vmul.f32 %v1148_v27, %v1527_v44  ;;  %1117 = vmatpush3.bf16.msra.mxu1 %v1114_v58 }
 0x131   :  { %v1150_v31 = vpop.eup %1149  ;;  %341 = vadd.xlane.f32.xlu1 %v340_v25  ;;  %356 = vadd.xlane.f32.xlu0 %v355_v29  ;;  %v343_v22 = vsel %vm92_vm0, %v315_v33, 0.0 }
 0x132   :  { %v318_v34 = vmul.f32 %v1150_v31, %v1527_v44  ;;  %v1152_v35 = vpop.eup %1151 }
 0x133   :  { %v1154_v37 = vpop.eup %1153  ;;  %v317_v39 = vmul.f32 %v1152_v35, %v1527_v44 }
 0x134   :  { %v352_v38 = vsel %vm92_vm0, %v318_v34, 0.0  ;;  %v1156_v40 = vpop.eup %1155  ;;  %v322_v41 = vmul.f32 %v1154_v37, %v1527_v44 }
 0x135   :  { %338 = vadd.xlane.f32.xlu1 %v337_v36  ;;  %362 = vadd.xlane.f32.xlu0 %v361_v32  ;;  %v1158_v42 = vpop.eup %1157  ;;  %v349_v43 = vsel %vm92_vm0, %v317_v39, 0.0  ;;  %v323_v45 = vmul.f32 %v1156_v40, %v1527_v44 }
 0x136   :  { %v364_v46 = vsel %vm92_vm0, %v322_v41, 0.0  ;;  %v316_v47 = vmul.f32 %v1158_v42, %v1527_v44  ;;  %v1160_v48 = vpop.eup %1159 }
 0x137   :  { %v367_v49 = vsel %vm92_vm0, %v323_v45, 0.0  ;;  %v324_v51 = vmul.f32 %v1160_v48, %v1527_v44 }
 0x138   :  { %v346_v50 = vsel %vm92_vm0, %v316_v47, 0.0 }
 0x139   :  { %344 = vadd.xlane.f32.xlu1 %v343_v22  ;;  %353 = vadd.xlane.f32.xlu0 %v352_v38  ;;  %v370_v52 = vsel %vm92_vm0, %v324_v51, 0.0 }
 0x13d   :  { %350 = vadd.xlane.f32.xlu1 %v349_v43  ;;  %365 = vadd.xlane.f32.xlu0 %v364_v46 }
 0x141   :  { %347 = vadd.xlane.f32.xlu1 %v346_v50  ;;  %368 = vadd.xlane.f32.xlu0 %v367_v49 }
 0x145   :  { %371 = vadd.xlane.f32.xlu1 %v370_v52 }
 0x1b2   :  { %v330_v59 = vpop.xlane.xlu0 %329 }
 0x1b3   :  { %1161 = vtanh.f32 %v330_v59 }
 0x1b6   :  { %v360_v61 = vpop.xlane.xlu0 %359  ;;  %v336_v44 = vpop.xlane.xlu1 %335 }
 0x1b7   :  { %1163 = vtanh.f32 %v360_v61 }
 0x1b8   :  { %1165 = vtanh.f32 %v336_v44 }
 0x1ba   :  { %v333_v63 = vpop.xlane.xlu1 %332  ;;  %v327_v0 = vpop.xlane.xlu0 %326 }
 0x1bb   :  { %1167 = vtanh.f32 %v333_v63 }
 0x1bc   :  { %1169 = vtanh.f32 %v327_v0 }
 0x1bd   :  { %v1162_v1 = vpop.eup %1161 }
 0x1be   :  { %v395_v2 = vsel %vm391_vm1, %v1162_v1, -inf  ;;  %v342_v3 = vpop.xlane.xlu1 %341  ;;  %v357_v4 = vpop.xlane.xlu0 %356 }
 0x1bf   :  { %v416_v6 = vrot.slane %v395_v2, 4  ;;  %1171 = vtanh.f32 %v342_v3 }
 0x1c0   :  { %1173 = vtanh.f32 %v357_v4 }
 0x1c1   :  { %v1573_v11 = vpop.eup %1163  ;;  %v417_v15 = vmax.f32 %v395_v2, %v416_v6 }
 0x1c2   :  { %v1575_v17 = vpop.eup %1165  ;;  %v405_v19 = vsel %vm391_vm1, %v1573_v11, -inf  ;;  %v339_v23 = vpop.xlane.xlu1 %338 }
 0x1c3   :  { %v363_v24 = vpop.xlane.xlu0 %362  ;;  %v418_v25 = vrot.slane %v417_v15, 2  ;;  %v476_v26 = vrot.slane %v405_v19, 4  ;;  %v397_v27 = vsel %vm391_vm1, %v1575_v17, -inf  ;;  %1175 = vtanh.f32 %v339_v23 }
 0x1c4   :  { %v428_v28 = vrot.slane %v397_v27, 4  ;;  %1177 = vtanh.f32 %v363_v24 }
 0x1c5   :  { %v1583_v29 = vpop.eup %1167  ;;  %v419_v30 = vmax.f32 %v417_v15, %v418_v25  ;;  %v477_v31 = vmax.f32 %v405_v19, %v476_v26 }
 0x1c6   :  { %v1585_v32 = vpop.eup %1169  ;;  %v429_v33 = vmax.f32 %v397_v27, %v428_v28  ;;  %v396_v34 = vsel %vm391_vm1, %v1583_v29, -inf  ;;  %v345_v35 = vpop.xlane.xlu1 %344 }
 0x1c7   :  { %v420_v36 = vrot.slane %v419_v30, 1  ;;  %v478_v37 = vrot.slane %v477_v31, 2  ;;  %v422_v22 = vrot.slane %v396_v34, 4  ;;  %v394_v38 = vsel %vm391_vm1, %v1585_v32, -inf  ;;  %v354_v39 = vpop.xlane.xlu0 %353 }
 0x1c8   :  { %v430_v40 = vrot.slane %v429_v33, 2  ;;  %v410_v41 = vrot.slane %v394_v38, 4  ;;  %1179 = vtanh.f32 %v345_v35 }
 0x1c9   :  { %v1593_v42 = vpop.eup %1171  ;;  %v421_v43 = vmax.f32 %v419_v30, %v420_v36  ;;  %v479_v45 = vmax.f32 %v477_v31, %v478_v37  ;;  %v423_v46 = vmax.f32 %v396_v34, %v422_v22  ;;  %1181 = vtanh.f32 %v354_v39 }
 0x1ca   :  { %v1595_v47 = vpop.eup %1173  ;;  %v431_v48 = vmax.f32 %v429_v33, %v430_v40  ;;  %v411_v49 = vmax.f32 %v394_v38, %v410_v41  ;;  %v399_v50 = vsel %vm391_vm1, %v1593_v42, -inf  ;;  %v351_v51 = vpop.xlane.xlu1 %350 }
 0x1cb   :  { %v507_v52 = vsub.f32 %v1162_v1, %v421_v43  ;;  %v480_v53 = vrot.slane %v479_v45, 1  ;;  %v424_v54 = vrot.slane %v423_v46, 2  ;;  %v440_v55 = vrot.slane %v399_v50, 4 }
 0x1cc   :  { %v432_v56 = vrot.slane %v431_v48, 1  ;;  %v412_v57 = vrot.slane %v411_v49, 2  ;;  %v404_v58 = vsel %vm391_vm1, %v1595_v47, -inf  ;;  %1183 = vtanh.f32 %v351_v51 }
 0x1cd   :  { %v1603_v59 = vpop.eup %1175  ;;  %v524_v60 = vmul.f32 1.442695, %v507_v52  ;;  %v481_v61 = vmax.f32 %v479_v45, %v480_v53  ;;  %v425_v44 = vmax.f32 %v423_v46, %v424_v54  ;;  %v441_v63 = vmax.f32 %v399_v50, %v440_v55 }
 0x1ce   :  { %v1605_v0 = vpop.eup %1177  ;;  %v433_v2 = vmax.f32 %v431_v48, %v432_v56  ;;  %v413_v1 = vmax.f32 %v411_v49, %v412_v57  ;;  %v470_v3 = vrot.slane %v404_v58, 4  ;;  %v398_v4 = vsel %vm391_vm1, %v1603_v59, -inf }
 0x1cf   :  { %1185 = vpow2.f32 %v524_v60  ;;  %v517_v6 = vsub.f32 %v1573_v11, %v481_v61  ;;  %v426_v15 = vrot.slane %v425_v44, 1  ;;  %v442_v19 = vrot.slane %v441_v63, 2 }
 0x1d0   :  { %v509_v23 = vsub.f32 %v1575_v17, %v433_v2  ;;  %v414_v24 = vrot.slane %v413_v1, 1  ;;  %v471_v25 = vmax.f32 %v404_v58, %v470_v3  ;;  %v434_v26 = vrot.slane %v398_v4, 4 }
 0x1d1   :  { %v544_v27 = vmul.f32 1.442695, %v517_v6  ;;  %v427_v28 = vmax.f32 %v425_v44, %v426_v15  ;;  %v443_v30 = vmax.f32 %v441_v63, %v442_v19  ;;  %v406_v31 = vsel %vm391_vm1, %v1605_v0, -inf }
 0x1d2   :  { %v1615_v33 = vpop.eup %1179  ;;  %v528_v34 = vmul.f32 1.442695, %v509_v23  ;;  %v415_v35 = vmax.f32 %v413_v1, %v414_v24  ;;  %v472_v36 = vrot.slane %v471_v25, 2  ;;  %v435_v11 = vmax.f32 %v398_v4, %v434_v26 }
 0x1d3   :  { %1187 = vpow2.f32 %v544_v27  ;;  %v508_v37 = vsub.f32 %v1583_v29, %v427_v28  ;;  %v444_v17 = vrot.slane %v443_v30, 1  ;;  %v482_v22 = vrot.slane %v406_v31, 4  ;;  %v1618_v38 = vpop.eup %1181 }
 0x1d4   :  { %1189 = vpow2.f32 %v528_v34  ;;  %v506_v39 = vsub.f32 %v1585_v32, %v415_v35  ;;  %v473_v40 = vmax.f32 %v471_v25, %v472_v36  ;;  %v436_v41 = vrot.slane %v435_v11, 2  ;;  %v366_v35 = vpop.xlane.xlu0 %365 }
 0x1d5   :  { %v526_v43 = vmul.f32 1.442695, %v508_v37  ;;  %v445_v45 = vmax.f32 %v443_v30, %v444_v17  ;;  %v483_v46 = vmax.f32 %v406_v31, %v482_v22  ;;  %v400_v48 = vsel %vm391_vm1, %v1615_v33, -inf }
 0x1d6   :  { %v1624_v49 = vpop.eup %1183  ;;  %v522_v50 = vmul.f32 1.442695, %v506_v39  ;;  %v474_v29 = vrot.slane %v473_v40, 1  ;;  %v437_v51 = vmax.f32 %v435_v11, %v436_v41  ;;  %v446_v52 = vrot.slane %v400_v48, 4 }
 0x1d7   :  { %1191 = vpow2.f32 %v526_v43  ;;  %v511_v53 = vsub.f32 %v1593_v42, %v445_v45  ;;  %v484_v54 = vrot.slane %v483_v46, 2  ;;  %v403_v32 = vsel %vm391_vm1, %v1618_v38, -inf }
 0x1d8   :  { %1193 = vpow2.f32 %v522_v50  ;;  %v475_v55 = vmax.f32 %v473_v40, %v474_v29  ;;  %v438_v56 = vrot.slane %v437_v51, 1  ;;  %v447_v57 = vmax.f32 %v400_v48, %v446_v52 }
 0x1d9   :  { %v1186_v58 = vpop.eup %1185  ;;  %v532_v60 = vmul.f32 1.442695, %v511_v53  ;;  %v485_v61 = vmax.f32 %v483_v46, %v484_v54  ;;  %v464_v44 = vrot.slane %v403_v32, 4  ;;  %v402_v34 = vsel %vm391_vm1, %v1624_v49, -inf }
 0x1da   :  { %v1632_v63 = vsel %vm391_vm1, %v1186_v58, 0.0  ;;  %v516_v2 = vsub.f32 %v1595_v47, %v475_v55  ;;  %v439_v42 = vmax.f32 %v437_v51, %v438_v56  ;;  %v448_v1 = vrot.slane %v447_v57, 2 }
 0x1db   :  { %v576_v3 = vrot.slane %v1632_v63, 4  ;;  %1195 = vpow2.f32 %v532_v60  ;;  %v486_v4 = vrot.slane %v485_v61, 1  ;;  %v465_v6 = vmax.f32 %v403_v32, %v464_v44 }
 0x1dc   :  { %v542_v15 = vmul.f32 1.442695, %v516_v2  ;;  %v510_v19 = vsub.f32 %v1603_v59, %v439_v42  ;;  %v449_v23 = vmax.f32 %v447_v57, %v448_v1  ;;  %v458_v39 = vrot.slane %v402_v34, 4 }
 0x1dd   :  { %v1188_v24 = vpop.eup %1187  ;;  %v577_v25 = vadd.f32 %v576_v3, %v1632_v63  ;;  %v487_v26 = vmax.f32 %v485_v61, %v486_v4  ;;  %v466_v27 = vrot.slane %v465_v6, 2 }
 0x1de   :  { %v1190_v28 = vpop.eup %1189  ;;  %v1640_v47 = vsel %vm391_vm1, %v1188_v24, 0.0  ;;  %v530_v30 = vmul.f32 1.442695, %v510_v19  ;;  %v450_v31 = vrot.slane %v449_v23, 1  ;;  %1197 = vpow2.f32 %v542_v15 }
 0x1df   :  { %v578_v36 = vrot.slane %v577_v25, 2  ;;  %v518_v59 = vsub.f32 %v1605_v0, %v487_v26  ;;  %v467_v37 = vmax.f32 %v465_v6, %v466_v27  ;;  %v636_v22 = vrot.slane %v1640_v47, 4 }
 0x1e0   :  { %1199 = vpow2.f32 %v530_v30  ;;  %v451_v11 = vmax.f32 %v449_v23, %v450_v31  ;;  %v1649_v41 = vsel %vm391_vm1, %v1190_v28, 0.0  ;;  %v459_v56 = vmax.f32 %v402_v34, %v458_v39 }
 0x1e1   :  { %v1192_v17 = vpop.eup %1191  ;;  %1201 = vtanh.f32 %v366_v35  ;;  %v468_v0 = vrot.slane %v467_v37, 1  ;;  %v579_v46 = vadd.f32 %v578_v36, %v577_v25  ;;  %v546_v29 = vmul.f32 1.442695, %v518_v59 }
 0x1e2   :  { %v1194_v40 = vpop.eup %1193  ;;  %v1653_v43 = vsel %vm391_vm1, %v1192_v17, 0.0  ;;  %v512_v45 = vsub.f32 %v1615_v33, %v451_v11  ;;  %v588_v54 = vrot.slane %v1649_v41, 4  ;;  %v637_v33 = vadd.f32 %v636_v22, %v1640_v47 }
 0x1e3   :  { %v582_v48 = vrot.slane %v1653_v43, 4  ;;  %v1659_v50 = vsel %vm391_vm1, %v1194_v40, 0.0  ;;  %v469_v55 = vmax.f32 %v467_v37, %v468_v0  ;;  %v580_v60 = vrot.slane %v579_v46, 1  ;;  %v348_v37 = vpop.xlane.xlu1 %347 }
 0x1e4   :  { %v570_v51 = vrot.slane %v1659_v50, 4  ;;  %v534_v52 = vmul.f32 1.442695, %v512_v45  ;;  %v589_v3 = vadd.f32 %v588_v54, %v1649_v41  ;;  %v460_v4 = vrot.slane %v459_v56, 2 }
 0x1e5   :  { %v1196_v53 = vpop.eup %1195  ;;  %v583_v32 = vadd.f32 %v582_v48, %v1653_v43  ;;  %v515_v42 = vsub.f32 %v1618_v38, %v469_v55  ;;  %v638_v15 = vrot.slane %v637_v33, 2  ;;  %v581_v26 = vadd.f32 %v580_v60, %v579_v46 }
 0x1e6   :  { %v571_v57 = vadd.f32 %v570_v51, %v1659_v50  ;;  %v1668_v58 = vsel %vm391_vm1, %v1196_v53, 0.0  ;;  %1203 = vpow2.f32 %v534_v52  ;;  %v590_v38 = vrot.slane %v589_v3, 2  ;;  %v369_v53 = vpop.xlane.xlu0 %368 }
 0x1e7   :  { %v584_v61 = vrot.slane %v583_v32, 2  ;;  %1205 = vpow2.f32 %v546_v29  ;;  %v600_v2 = vrot.slane %v1668_v58, 4  ;;  %v540_v24 = vmul.f32 1.442695, %v515_v42 }
 0x1e8   :  { %v572_v44 = vrot.slane %v571_v57, 2  ;;  %v1198_v1 = vpop.eup %1197  ;;  %v461_v34 = vmax.f32 %v459_v56, %v460_v4  ;;  %v639_v35 = vadd.f32 %v638_v15, %v637_v33  ;;  %v591_v51 = vadd.f32 %v590_v38, %v589_v3 }
 0x1e9   :  { %v585_v19 = vadd.f32 %v584_v61, %v583_v32  ;;  %v601_v28 = vadd.f32 %v600_v2, %v1668_v58  ;;  %v1682_v31 = vsel %vm391_vm1, %v1198_v1, 0.0  ;;  %1207 = vpow2.f32 %v540_v24  ;;  %v372_v1 = vpop.xlane.xlu1 %371 }
 0x1ea   :  { %v1200_v6 = vpop.eup %1199  ;;  %v573_v23 = vadd.f32 %v572_v44, %v571_v57  ;;  %1209 = vrcp.f32 %v581_v26  ;;  %v462_v22 = vrot.slane %v461_v34, 1  ;;  %v630_v45 = vrot.slane %v1682_v31, 4 }
 0x1eb   :  { %v1673_v25 = vpop.eup %1201  ;;  %v1678_v30 = vsel %vm391_vm1, %v1200_v6, 0.0  ;;  %v586_v36 = vrot.slane %v585_v19, 1  ;;  %v602_v40 = vrot.slane %v601_v28, 2  ;;  %v640_v29 = vrot.slane %v639_v35, 1 }
 0x1ec   :  { %v574_v27 = vrot.slane %v573_v23, 1  ;;  %v407_v11 = vsel %vm391_vm1, %v1673_v25, -inf  ;;  %v594_v17 = vrot.slane %v1678_v30, 4  ;;  %v463_v46 = vmax.f32 %v461_v34, %v462_v22 }
 0x1ed   :  { %v488_v48 = vrot.slane %v407_v11, 4  ;;  %v587_v52 = vadd.f32 %v586_v36, %v585_v19  ;;  %v603_v33 = vadd.f32 %v602_v40, %v601_v28  ;;  %v631_v57 = vadd.f32 %v630_v45, %v1682_v31 }
 0x1ee   :  { %v575_v59 = vadd.f32 %v574_v27, %v573_v23  ;;  %v595_v54 = vadd.f32 %v594_v17, %v1678_v30  ;;  %v514_v32 = vsub.f32 %v1624_v49, %v463_v46  ;;  %v955_v42 = vrot.slane %v1458_v5, 7 }
 0x1ef   :  { %v489_v55 = vmax.f32 %v407_v11, %v488_v48  ;;  %v592_v49 = vrot.slane %v591_v51, 1  ;;  %v641_v4 = vadd.f32 %v640_v29, %v639_v35  ;;  %v604_v19 = vrot.slane %v603_v33, 1 }
 0x1f0   :  { %v1204_v39 = vpop.eup %1203  ;;  %1211 = vrcp.f32 %v575_v59  ;;  %v538_v61 = vmul.f32 1.442695, %v514_v32  ;;  %v596_v6 = vrot.slane %v595_v54, 2  ;;  %v632_v28 = vrot.slane %v631_v57, 2 }
 0x1f1   :  { %v1206_v0 = vpop.eup %1205  ;;  %1213 = vtanh.f32 %v348_v37  ;;  %v1693_v56 = vsel %vm391_vm1, %v1204_v39, 0.0  ;;  %v490_v44 = vrot.slane %v489_v55, 2  ;;  %v956_v35 = vrot.slane %v1466_v8, 6 }
 0x1f2   :  { %v1698_v60 = vsel %vm391_vm1, %v1206_v0, 0.0  ;;  %1215 = vtanh.f32 %v369_v53  ;;  %v606_v2 = vrot.slane %v1693_v56, 4  ;;  %v958_v59 = vrot.slane %v1470_v10, 5 }
 0x1f3   :  { %1217 = vrcp.f32 %v587_v52  ;;  %v1208_v3 = vpop.eup %1207  ;;  %v491_v15 = vmax.f32 %v489_v55, %v490_v44  ;;  %v642_v23 = vrot.slane %v1698_v60, 4  ;;  %v972_v11 = vrot.slane %v1462_v7, 5 }
 0x1f4   :  { %1219 = vpow2.f32 %v538_v61  ;;  %v1705_v24 = vsel %vm391_vm1, %v1208_v3, 0.0  ;;  %v607_v26 = vadd.f32 %v606_v2, %v1693_v56  ;;  %v1210_v27 = vpop.eup %1209  ;;  %v593_v37 = vadd.f32 %v592_v49, %v591_v51 }
 0x1f5   :  { %v624_v38 = vrot.slane %v1705_v24, 4  ;;  %v492_v34 = vrot.slane %v491_v15, 1  ;;  %1221 = vtanh.f32 %v372_v1  ;;  %v597_v22 = vadd.f32 %v596_v6, %v595_v54 }
 0x1f6   :  { %1223 = vrcp.f32 %v641_v4  ;;  %v605_v45 = vadd.f32 %v604_v19, %v603_v33  ;;  %v643_v0 = vadd.f32 %v642_v23, %v1698_v60  ;;  %v608_v48 = vrot.slane %v607_v26, 2 }
 0x1f7   :  { %v625_v39 = vadd.f32 %v624_v38, %v1705_v24  ;;  %v493_v40 = vmax.f32 %v491_v15, %v492_v34  ;;  %v633_v29 = vadd.f32 %v632_v28, %v631_v57  ;;  %v1721_v32 = vsel %vm853_vm2, %v956_v35, %v955_v42 }
 0x1f8   :  { %v669_v54 = vmul.f32 %v1210_v27, %v1632_v63  ;;  %1225 = vrcp.f32 %v593_v37  ;;  %v598_v61 = vrot.slane %v597_v22, 1  ;;  %v644_v57 = vrot.slane %v643_v0, 2 }
 0x1f9   :  { %v626_v52 = vrot.slane %v625_v39, 2  ;;  %v519_v53 = vsub.f32 %v1673_v25, %v493_v40  ;;  %1227 = vrcp.f32 %v605_v45  ;;  %v609_v42 = vadd.f32 %v608_v48, %v607_v26 }
 0x1fa   :  { %v1212_v36 = vpop.eup %1211  ;;  %v969_v63 = vrot.slane %v1501_v20, 7  ;;  %v634_v4 = vrot.slane %v633_v29, 1  ;;  %v699_v6 = vmul.f32 %v669_v54, %v1466_v8  ;;  %v599_v28 = vadd.f32 %v598_v61, %v597_v22 }
 0x1fb   :  { %v1712_v17 = vpop.eup %1213  ;;  %v667_v55 = vmul.f32 %v1212_v36, %v1659_v50  ;;  %v627_v44 = vadd.f32 %v626_v52, %v625_v39  ;;  %v548_v2 = vmul.f32 1.442695, %v519_v53  ;;  %v645_v36 = vadd.f32 %v644_v57, %v643_v0 }
 0x1fc   :  { %v401_v46 = vsel %vm391_vm1, %v1712_v17, -inf  ;;  %v1725_v33 = vpop.eup %1215  ;;  %v610_v37 = vrot.slane %v609_v42, 1  ;;  %v635_v39 = vadd.f32 %v634_v4, %v633_v29  ;;  %v721_v0 = vsel %vm92_vm0, %v699_v6, 0.0 }
 0x1fd   :  { %v452_v51 = vrot.slane %v401_v46, 4  ;;  %v1218_v1 = vpop.eup %1217  ;;  %v408_v25 = vsel %vm391_vm1, %v1725_v33, -inf  ;;  %1229 = vpow2.f32 %v548_v2  ;;  %v698_v15 = vmul.f32 %v667_v55, %v1458_v5 }
 0x1fe   :  { %v1220_v3 = vpop.eup %1219  ;;  %v494_v23 = vrot.slane %v408_v25, 4  ;;  %v628_v38 = vrot.slane %v627_v44, 1  ;;  %v671_v22 = vmul.f32 %v1218_v1, %v1653_v43  ;;  %1231 = vrcp.f32 %v599_v28 }
 0x1ff   :  { %v453_v49 = vmax.f32 %v401_v46, %v452_v51  ;;  %v1735_v19 = vsel %vm391_vm1, %v1220_v3, 0.0  ;;  %v1737_v27 = vpop.eup %1221  ;;  %v714_v52 = vsel %vm92_vm0, %v698_v15, 0.0  ;;  %v646_v2 = vrot.slane %v645_v36, 1 }
 0x200   :  { %v618_v26 = vrot.slane %v1735_v19, 4  ;;  %v495_v35 = vmax.f32 %v408_v25, %v494_v23  ;;  %v409_v8 = vsel %vm391_vm1, %v1737_v27, -inf  ;;  %v1743_v5 = vpop.eup %1223  ;;  %v629_v53 = vadd.f32 %v628_v38, %v627_v44 }
 0x201   :  { %v454_v50 = vrot.slane %v453_v49, 2  ;;  %v500_v46 = vrot.slane %v409_v8, 4  ;;  %1233 = vrcp.f32 %v635_v39  ;;  %v700_v4 = vmul.f32 %v671_v22, %v1470_v10 }
 0x202   :  { %v619_v40 = vadd.f32 %v618_v26, %v1735_v19  ;;  %v496_v48 = vrot.slane %v495_v35, 2  ;;  %v1226_v61 = vpop.eup %1225  ;;  %v715_v44 = vrot.slane %v714_v52, 4  ;;  %1235 = vrcp.f32 %v629_v53 }
 0x203   :  { %v455_v34 = vmax.f32 %v453_v49, %v454_v50  ;;  %v501_v55 = vmax.f32 %v409_v8, %v500_v46  ;;  %v611_v49 = vadd.f32 %v610_v37, %v609_v42  ;;  %v1750_v1 = vpop.eup %1227  ;;  %v722_v50 = vrot.slane %v721_v0, 4 }
 0x204   :  { %v620_v51 = vrot.slane %v619_v40, 2  ;;  %v497_v29 = vmax.f32 %v495_v35, %v496_v48  ;;  %v647_v38 = vadd.f32 %v646_v2, %v645_v36  ;;  %v970_v8 = vrot.slane %v1506_v21, 6 }
 0x205   :  { %v456_v45 = vrot.slane %v455_v34, 1  ;;  %v502_v43 = vrot.slane %v501_v55, 2  ;;  %1237 = vrcp.f32 %v611_v49  ;;  %v723_v39 = vadd.f32 %v722_v50, %v721_v0  ;;  %v1259_v50 = vld [vmem:[#allocation2 + $0x18] sm:$0xff] }
 0x206   :  { %v621_v57 = vadd.f32 %v620_v51, %v619_v40  ;;  %v498_v3 = vrot.slane %v497_v29, 1  ;;  %v728_v40 = vsel %vm92_vm0, %v700_v4, 0.0  ;;  %v716_v46 = vadd.f32 %v715_v44, %v714_v52  ;;  %v1787_v4 = vld [vmem:[#allocation2 + $0x70] sm:$0xff] }
 0x207   :  { %v457_v54 = vmax.f32 %v455_v34, %v456_v45  ;;  %v1230_v6 = vpop.eup %1229  ;;  %v503_v28 = vmax.f32 %v501_v55, %v502_v43  ;;  %v960_v22 = vrot.slane %v1478_v12, 4  ;;  %v974_v48 = vrot.slane %v1468_v9, 4 }
 0x208   :  { %v622_v15 = vrot.slane %v621_v57, 1  ;;  %v1755_v42 = vsel %vm391_vm1, %v1230_v6, 0.0  ;;  %v962_v53 = vrot.slane %v1483_v14, 3  ;;  %v959_v21 = vsel %vm855_vm3, %v958_v59, %v1721_v32  ;;  %v1775_v32 = vld [vmem:[#allocation2 + $0x60] sm:$0xff] }
 0x209   :  { %v513_v25 = vsub.f32 %v1712_v17, %v457_v54  ;;  %v499_v17 = vmax.f32 %v497_v29, %v498_v3  ;;  %v648_v34 = vrot.slane %v1755_v42, 4  ;;  %v504_v35 = vrot.slane %v503_v28, 1  ;;  %v1232_v54 = vpop.eup %1231 }
 0x20a   :  { %v623_v26 = vadd.f32 %v622_v15, %v621_v57  ;;  %v971_v52 = vsel %vm853_vm2, %v970_v8, %v969_v63  ;;  %v673_v12 = vmul.f32 %v1226_v61, %v1649_v41  ;;  %v729_v9 = vrot.slane %v728_v40, 4 }
 0x20b   :  { %v536_v23 = vmul.f32 1.442695, %v513_v25  ;;  %v520_v37 = vsub.f32 %v1725_v33, %v499_v17  ;;  %v649_v36 = vadd.f32 %v648_v34, %v1755_v42  ;;  %v505_v45 = vmax.f32 %v503_v28, %v504_v35  ;;  %v1234_v55 = vpop.eup %1233 }
 0x20c   :  { %v717_v49 = vrot.slane %v716_v46, 2  ;;  %v724_v10 = vrot.slane %v723_v39, 2  ;;  %v964_v59 = vrot.slane %v1491_v16, 2  ;;  %v966_v57 = vrot.slane %v1494_v18, 1  ;;  %v1236_v63 = vpop.eup %1235 }
 0x20d   :  { %1239 = vpow2.f32 %v536_v23  ;;  %v550_v51 = vmul.f32 1.442695, %v520_v37  ;;  %v650_v33 = vrot.slane %v649_v36, 2  ;;  %v521_v0 = vsub.f32 %v1737_v27, %v505_v45  ;;  %v1260_v37 = vld [vmem:[#allocation2 + $0x20] sm:$0xff]  ;;  %v1261_v45 = vld [vmem:[#allocation2 + $0x58] sm:$0xff] }
 0x20e   :  { %1241 = vrcp.f32 %v623_v26  ;;  %v976_v27 = vrot.slane %v1775_v32, 3  ;;  %v978_v20 = vrot.slane %v1481_v13, 2  ;;  %v1781_v41 = vsel %vm857_vm4, %v960_v22, %v959_v21  ;;  %v1262_v21 = vld [vmem:[#allocation2 + $0x50] sm:$0xff] }
 0x20f   :  { %1243 = vrcp.f32 %v647_v38  ;;  %v651_v2 = vadd.f32 %v650_v33, %v649_v36  ;;  %v552_v29 = vmul.f32 1.442695, %v521_v0  ;;  %v675_v25 = vmul.f32 %v1232_v54, %v1678_v30  ;;  %v1238_v43 = vpop.eup %1237  ;;  %v1263_v0 = vld [vmem:[#allocation2 + $0x48] sm:$0xff]  ;;  %v1264_v54 = vld [vmem:[#allocation2 + $0x40] sm:$0xff] }
 0x210   :  { %1245 = vpow2.f32 %v550_v51  ;;  %v973_v3 = vsel %vm855_vm3, %v972_v11, %v971_v52  ;;  %v980_v44 = vrot.slane %v1787_v4, 1  ;;  %v701_v6 = vmul.f32 %v1259_v50, %v673_v12 }
 0x211   :  { %v652_v61 = vrot.slane %v651_v2, 1  ;;  %1247 = vpow2.f32 %v552_v29  ;;  %v730_v15 = vadd.f32 %v729_v9, %v728_v40  ;;  %v689_v28 = vmul.f32 %v1743_v5, %v1640_v47 }
 0x212   :  { %v718_v17 = vadd.f32 %v717_v49, %v716_v46  ;;  %v725_v26 = vadd.f32 %v724_v10, %v723_v39  ;;  %v687_v30 = vmul.f32 %v1234_v55, %v1682_v31  ;;  %v685_v7 = vmul.f32 %v1236_v63, %v1705_v24  ;;  %v1266_v10 = vld [vmem:[#allocation2 + $0x30] sm:$0xff] }
 0x213   :  { %v653_v38 = vadd.f32 %v652_v61, %v651_v2  ;;  %v677_v34 = vmul.f32 %v1750_v1, %v1668_v58  ;;  %v702_v47 = vmul.f32 %v1260_v37, %v675_v25  ;;  %v1802_v5 = vsel %vm857_vm4, %v974_v48, %v973_v3 }
 0x214   :  { %v679_v24 = vmul.f32 %v1238_v43, %v1693_v56  ;;  %v731_v39 = vrot.slane %v730_v15, 2  ;;  %v735_v40 = vsel %vm92_vm0, %v701_v6, 0.0  ;;  %v709_v46 = vmul.f32 %v1261_v45, %v689_v28 }
 0x215   :  { %1249 = vrcp.f32 %v653_v38  ;;  %v719_v1 = vrot.slane %v718_v17, 1  ;;  %v726_v22 = vrot.slane %v725_v26, 1  ;;  %v708_v33 = vmul.f32 %v1262_v21, %v687_v30 }
 0x216   :  { %v707_v48 = vmul.f32 %v1263_v0, %v685_v7  ;;  %v736_v55 = vrot.slane %v735_v40, 4  ;;  %v742_v2 = vsel %vm92_vm0, %v702_v47, 0.0  ;;  %v704_v63 = vmul.f32 %v1266_v10, %v679_v24 }
 0x217   :  { %v1240_v23 = vpop.eup %1239  ;;  %v1815_v61 = vadd.f32 %v731_v39, %v730_v15  ;;  %v1818_v50 = vadd.f32 %v719_v1, %v718_v17  ;;  %v1820_v6 = vadd.f32 %v726_v22, %v725_v26  ;;  %v743_v30 = vrot.slane %v742_v2, 4 }
 0x218   :  { %v1796_v11 = vsel %vm391_vm1, %v1240_v23, 0.0  ;;  %v1242_v35 = vpop.eup %1241  ;;  %v777_v23 = vsel %vm92_vm0, %v707_v48, 0.0  ;;  %v784_v24 = vsel %vm92_vm0, %v708_v33, 0.0  ;;  %v791_v48 = vsel %vm92_vm0, %v709_v46, 0.0 }
 0x219   :  { %v612_v8 = vrot.slane %v1796_v11, 4  ;;  %v683_v31 = vmul.f32 %v1242_v35, %v1735_v19  ;;  %v1244_v36 = vpop.eup %1243  ;;  %v1265_v19 = vld [vmem:[#allocation2 + $0x28] sm:$0xff]  ;;  %v733_v26 = vrot.slane %v1815_v61, 1  ;;  %v737_v35 = vadd.f32 %v736_v55, %v735_v40 }
 0x21a   :  { %v1246_v51 = vpop.eup %1245  ;;  %v703_v12 = vmul.f32 %v1265_v19, %v677_v34  ;;  %v691_v43 = vmul.f32 %v1244_v36, %v1698_v60  ;;  %v778_v47 = vrot.slane %v777_v23, 4  ;;  %v744_v45 = vadd.f32 %v743_v30, %v742_v2  ;;  %v1267_v55 = vld [vmem:[#allocation2 + $0x68] sm:$0xff] }
 0x21b   :  { %v613_v58 = vadd.f32 %v612_v8, %v1796_v11  ;;  %v706_v52 = vmul.f32 %v1264_v54, %v683_v31  ;;  %v1810_v56 = vsel %vm391_vm1, %v1246_v51, 0.0  ;;  %v1248_v25 = vpop.eup %1247  ;;  %v756_v8 = vsel %vm92_vm0, %v704_v63, 0.0 }
 0x21c   :  { %v654_v49 = vrot.slane %v1810_v56, 4  ;;  %v1826_v38 = vsel %vm391_vm1, %v1248_v25, 0.0  ;;  %v749_v60 = vsel %vm92_vm0, %v703_v12, 0.0  ;;  %v710_v40 = vmul.f32 %v1775_v32, %v691_v43 }
 0x21d   :  { %v614_v9 = vrot.slane %v613_v58, 2  ;;  %v770_v29 = vsel %vm92_vm0, %v706_v52, 0.0  ;;  %v660_v7 = vrot.slane %v1826_v38, 4  ;;  %v757_v21 = vrot.slane %v756_v8, 4 }
 0x21e   :  { %v655_v28 = vadd.f32 %v654_v49, %v1810_v56  ;;  %v771_v15 = vrot.slane %v770_v29, 4  ;;  %v785_v0 = vrot.slane %v784_v24, 4  ;;  %v738_v52 = vrot.slane %v737_v35, 2 }
 0x21f   :  { %v615_v3 = vadd.f32 %v614_v9, %v613_v58  ;;  %v1250_v37 = vpop.eup %1249  ;;  %v661_v62 = vadd.f32 %v660_v7, %v1826_v38  ;;  %v750_v58 = vrot.slane %v749_v60, 4  ;;  %v779_v19 = vadd.f32 %v778_v47, %v777_v23 }
 0x220   :  { %v656_v17 = vrot.slane %v655_v28, 2  ;;  %v693_v39 = vmul.f32 %v1250_v37, %v1755_v42  ;;  %v772_v22 = vadd.f32 %v771_v15, %v770_v29  ;;  %v977_v42 = vsel %vm859_vm5, %v976_v27, %v1802_v5  ;;  %v1268_v15 = vld [vmem:[#allocation2 + $0x78] sm:$0xff] }
 0x221   :  { %v616_v34 = vrot.slane %v615_v3, 1  ;;  %v662_v1 = vrot.slane %v661_v62, 2  ;;  %v745_v12 = vrot.slane %v744_v45, 2  ;;  %v751_v9 = vadd.f32 %v750_v58, %v749_v60 }
 0x222   :  { %v657_v36 = vadd.f32 %v656_v17, %v655_v28  ;;  %v711_v2 = vmul.f32 %v1267_v55, %v693_v39  ;;  %v773_v29 = vrot.slane %v772_v22, 2  ;;  %v792_v10 = vrot.slane %v791_v48, 4 }
 0x223   :  { %v617_v31 = vadd.f32 %v616_v34, %v615_v3  ;;  %v663_v54 = vadd.f32 %v662_v1, %v661_v62  ;;  %v798_v63 = vsel %vm92_vm0, %v710_v40, 0.0  ;;  %v758_v46 = vadd.f32 %v757_v21, %v756_v8 }
 0x224   :  { %v658_v51 = vrot.slane %v657_v36, 1  ;;  %v786_v25 = vadd.f32 %v785_v0, %v784_v24  ;;  %v979_v43 = vsel %vm861_vm6, %v978_v20, %v977_v42  ;;  %v739_v3 = vadd.f32 %v738_v52, %v737_v35 }
 0x225   :  { %1251 = vrcp.f32 %v617_v31  ;;  %v664_v49 = vrot.slane %v663_v54, 1  ;;  %v780_v27 = vrot.slane %v779_v19, 2  ;;  %v981_v5 = vsel %vm863_vm7, %v980_v44, %v979_v43 }
 0x226   :  { %v659_v33 = vadd.f32 %v658_v51, %v657_v36  ;;  %v746_v23 = vadd.f32 %v745_v12, %v744_v45  ;;  %v799_v28 = vrot.slane %v798_v63, 4  ;;  %v805_v30 = vsel %vm92_vm0, %v711_v2, 0.0 }
 0x227   :  { %v665_v32 = vadd.f32 %v664_v49, %v663_v54  ;;  %v982_v7 = vsel %vm865_vm8, %v1268_v15, %v981_v5  ;;  %v774_v34 = vadd.f32 %v773_v29, %v772_v22  ;;  %v793_v60 = vadd.f32 %v792_v10, %v791_v48 }
 0x228   :  { %1253 = vrcp.f32 %v659_v33  ;;  %985 = vrot.lane.b32.xlu1 %v982_v7, %s1369_s3  ;;  %v963_v13 = vsel %vm859_vm5, %v962_v53, %v1781_v41  ;;  %v752_v20 = vrot.slane %v751_v9, 2  ;;  %v759_v17 = vrot.slane %v758_v46, 2  ;;  %v1269_v41 = vld [vmem:[#allocation2 + $0x38] sm:$0xff] }
 0x229   :  { %1255 = vrcp.f32 %v665_v32  ;;  %v787_v44 = vrot.slane %v786_v25, 2  ;;  %v965_v35 = vsel %vm861_vm6, %v964_v59, %v963_v13  ;;  %v734_v37 = vadd.f32 %v733_v26, %v1815_v61 }
 0x22a   :  { %v781_v47 = vadd.f32 %v780_v27, %v779_v19  ;;  %v806_v62 = vrot.slane %v805_v30, 4  ;;  %v967_v31 = vsel %vm863_vm7, %v966_v57, %v965_v35  ;;  %v740_v24 = vrot.slane %v739_v3, 1 }
 0x22b   :  { %v800_v53 = vadd.f32 %v799_v28, %v798_v63  ;;  %v968_v39 = vsel %vm865_vm8, %v1269_v41, %v967_v31  ;;  %v747_v36 = vrot.slane %v746_v23, 1  ;;  %v854_v16 = vsel %vm853_vm2, %v1820_v6, %v1818_v50 }
 0x22c   :  { %v775_v59 = vrot.slane %v774_v34, 1  ;;  %v794_v61 = vrot.slane %v793_v60, 2  ;;  %983 = vrot.lane.b32.xlu0 %v968_v39, %s1369_s3  ;;  %v753_v45 = vadd.f32 %v752_v20, %v751_v9  ;;  %v760_v18 = vadd.f32 %v759_v17, %v758_v46 }
 0x22d   :  { %v788_v58 = vadd.f32 %v787_v44, %v786_v25  ;;  %v782_v57 = vrot.slane %v781_v47, 1  ;;  %v807_v1 = vadd.f32 %v806_v62, %v805_v30  ;;  %v741_v40 = vadd.f32 %v740_v24, %v739_v3 }
 0x22e   :  { %v856_v51 = vsel %vm855_vm3, %v734_v37, %v854_v16  ;;  %v801_v21 = vrot.slane %v800_v53, 2  ;;  %v776_v50 = vadd.f32 %v775_v59, %v774_v34  ;;  %v795_v6 = vadd.f32 %v794_v61, %v793_v60 }
 0x22f   :  { %v1252_v8 = vpop.eup %1251  ;;  %v748_v54 = vadd.f32 %v747_v36, %v746_v23  ;;  %v754_v52 = vrot.slane %v753_v45, 1  ;;  %v761_v19 = vrot.slane %v760_v18, 1  ;;  %v789_v42 = vrot.slane %v788_v58, 1 }
 0x230   :  { %v681_v14 = vmul.f32 %v1252_v8, %v1796_v11  ;;  %v783_v55 = vadd.f32 %v782_v57, %v781_v47  ;;  %v808_v2 = vrot.slane %v807_v1, 2  ;;  %v858_v49 = vsel %vm857_vm4, %v741_v40, %v856_v51 }
 0x231   :  { %v802_v10 = vadd.f32 %v801_v21, %v800_v53  ;;  %v796_v46 = vrot.slane %v795_v6, 1  ;;  %v755_v43 = vadd.f32 %v754_v52, %v753_v45  ;;  %v790_v3 = vadd.f32 %v789_v42, %v788_v58  ;;  %v1030_v58 = vld [vmem:[%s1912_s5] ss:$0 sm:$0xff] }
 0x232   :  { %v705_v26 = vmul.f32 %v1269_v41, %v681_v14  ;;  %v1254_v11 = vpop.eup %1253  ;;  %v867_v25 = vsel %vm853_vm2, %v783_v55, %v776_v50  ;;  %v762_v5 = vadd.f32 %v761_v19, %v760_v18  ;;  %v809_v28 = vadd.f32 %v808_v2, %v807_v1 }
 0x233   :  { %v695_v48 = vmul.f32 %v1254_v11, %v1810_v56  ;;  %v1256_v33 = vpop.eup %1255  ;;  %v803_v30 = vrot.slane %v802_v10, 1  ;;  %v868_v34 = vsel %vm855_vm3, %v790_v3, %v867_v25  ;;  %v797_v13 = vadd.f32 %v796_v46, %v795_v6 }
 0x234   :  { %v763_v22 = vsel %vm92_vm0, %v705_v26, 0.0  ;;  %v697_v29 = vmul.f32 %v1256_v33, %v1826_v38  ;;  %v810_v35 = vrot.slane %v809_v28, 1 }
 0x235   :  { %v764_v0 = vrot.slane %v763_v22, 4  ;;  %v712_v9 = vmul.f32 %v1787_v4, %v695_v48  ;;  %v860_v4 = vsel %vm859_vm5, %v748_v54, %v858_v49  ;;  %v869_v37 = vsel %vm857_vm4, %v797_v13, %v868_v34 }
 0x236   :  { %v713_v32 = vmul.f32 %v1268_v15, %v697_v29  ;;  %v862_v17 = vsel %vm861_vm6, %v755_v43, %v860_v4  ;;  %v804_v62 = vadd.f32 %v803_v30, %v802_v10  ;;  %v811_v39 = vadd.f32 %v810_v35, %v809_v28 }
 0x237   :  { %v765_v12 = vadd.f32 %v764_v0, %v763_v22  ;;  %v812_v56 = vsel %vm92_vm0, %v712_v9, 0.0  ;;  %v864_v47 = vsel %vm863_vm7, %v762_v5, %v862_v17 }
 0x238   :  { %v813_v27 = vrot.slane %v812_v56, 4  ;;  %v819_v38 = vsel %vm92_vm0, %v713_v32, 0.0  ;;  %v870_v41 = vsel %vm859_vm5, %v804_v62, %v869_v37 }
 0x239   :  { %v766_v63 = vrot.slane %v765_v12, 2  ;;  %v820_v20 = vrot.slane %v819_v38, 4  ;;  %v871_v61 = vsel %vm861_vm6, %v811_v39, %v870_v41 }
 0x23a   :  { %v814_v7 = vadd.f32 %v813_v27, %v812_v56 }
 0x23b   :  { %v767_v23 = vadd.f32 %v766_v63, %v765_v12  ;;  %v821_v8 = vadd.f32 %v820_v20, %v819_v38 }
 0x23c   :  { %v815_v44 = vrot.slane %v814_v7, 2 }
 0x23d   :  { %v768_v60 = vrot.slane %v767_v23, 1  ;;  %v822_v24 = vrot.slane %v821_v8, 2 }
 0x23e   :  { %v816_v31 = vadd.f32 %v815_v44, %v814_v7 }
 0x23f   :  { %v769_v15 = vadd.f32 %v768_v60, %v767_v23  ;;  %v823_v36 = vadd.f32 %v822_v24, %v821_v8 }
 0x240   :  { %v817_v53 = vrot.slane %v816_v31, 1 }
 0x241   :  { %v866_v14 = vsel %vm865_vm8, %v769_v15, %v864_v47  ;;  %v824_v59 = vrot.slane %v823_v36, 1 }
 0x242   :  { %1099 = vmatprep.mubr.msk.f32.mxu1 %vm92_vm0, %v866_v14  ;;  %v818_v16 = vadd.f32 %v817_v53, %v816_v31 }
 0x243   :  { %v825_v26 = vadd.f32 %v824_v59, %v823_v36 }
 0x244   :  { %v872_v45 = vsel %vm863_vm7, %v818_v16, %v871_v61 }
 0x245   :  { %v873_v18 = vsel %vm865_vm8, %v825_v26, %v872_v45 }
 0x246   :  { %1100 = vmatmul.mubr.msk.f32.vlgmr.msra.gmra.mrb[6].mxu1 %vm92_vm0, %v873_v18 }
 0x29a   :  { %v986_v22 = vpop.permute.xlu1 %985 }
 0x29e   :  { %v984_v21 = vpop.permute.xlu0 %983 }
 0x319   :  { %v1101_v57 = vpop.f32.mrb[6].mxu1 }
 0x31a   :  { %v950_v1 = vadd.f32 %v1101_v57, %v1030_v58  ;;  %v944_v11 = vpop.f32.mrb[7].mxu1 }
 0x31b   :  { %v945_v40 = vadd.f32 %v1030_v58, %v944_v11 }
 0x31c   :  { %v954_v51 = vmax.f32 %v950_v1, 0.0 }
 0x31d   :  { %v953_v0 = vmax.f32 %v945_v40, 0.0 }
 0x31e   :  { %v990_v48 = vsel %vm92_vm0, %v954_v51, %v986_v22 }
 0x31f   :  { %v989_v50 = vsel %vm92_vm0, %v953_v0, %v984_v21  ;;  %993 = vst.msk [vmem:[#allocation8 + $0x8] sm:$0xff] %vm991_vm9, %v990_v48 }
 0x320   :  { %992 = vst.msk [vmem:[#allocation8] sm:$0xff] %vm991_vm9, %v989_v50 }
 0x321   :  { %1347 = shalt.err (!%p1344_p0)
}
 0x322   :  { %s1348_s19 = scalar_lea.hbm %s1913_s6, 256 }
 0x323   :  { %p1349_p1 = scmp.ne.s32.totalorder %s1913_s6, %s1348_s19  ;;  %p1352_p2 = scmp.lt.u32.totalorder %s1348_s19, %s1913_s6 }
 0x325   :  { %p1354_p3 = pnand %p1352_p2, %p1349_p1 }
 0x327   :  { %1357 = shalt.err (!%p1354_p3)
}
 0x328   :  { %1005 = dma.vmem_to_hbm [thread:$0]  %s1000_s16, 256, %s1913_s6, [#allocation4], %s1366_s9, %s1366_s9, %s1367_s10  }
 0x329   :  { %1362 = dma.done.wait [#allocation4], 256  }
 0x32a   :  { %1363 = vsyncadd [#allocation4], 4294967040 }
 0x32b   :  { %1009 = vsyncpa [#allocation3], 1 }
 0x32c   :  { %1010 = vsyncpa [#allocation6], 1 }
 0x32d   :  { %1011 = vsyncpa [#allocation4], 1 }

</bundles_post_ra>
